<compile_context>
chip_gen: v7x
topology: tpu7x:2x2x1
jax: 0.10.0
libtpu: 0.0.40
codegen_flags: <defaults>
</compile_context>

<pallas_src>
import jax
import jax.numpy as jnp
from jax import lax
from jax.experimental import pallas as pl
from jax.experimental.pallas import tpu as pltpu


def _round_up(n, m):
    return ((n + m - 1) // m) * m


def _cdiv(a, b):
    return (a + b - 1) // b


def _qnet_kernel(x_ref, w1_ref, b1_ref, w2_ref, b2_ref, w3_ref, b3_ref,
                 w4_ref, b4_ref, o_ref):
    # x arrives in native (TILE_B, d_in) layout.  Layer 1 contracts on the
    # feature axis of both operands, producing a batch-on-lanes (128, TILE_B)
    # activation; all later layers are W (out, in) @ h (in, TILE_B).
    x = x_ref[...]                                                        # (TB, 3)
    h = lax.dot_general(w1_ref[...], x, (((1,), (1,)), ((), ())),
                        preferred_element_type=jnp.float32) + b1_ref[...]  # (128, TB)
    h = jnp.maximum(h, 0.0)
    h = jnp.dot(w2_ref[...], h, preferred_element_type=jnp.float32) + b2_ref[...]
    h = jnp.maximum(h, 0.0)                                               # (64, TB)
    h = jnp.dot(w3_ref[...], h, preferred_element_type=jnp.float32) + b3_ref[...]
    h = jnp.maximum(h, 0.0)                                               # (32, TB)
    y = jnp.dot(w4_ref[...], h, preferred_element_type=jnp.float32) + b4_ref[...]
    o_ref[...] = y                                                        # (d_out, TB)


def qnet_forward(x, params, *, target_tile_b=8192):
    """Forward pass of QNET. `x` is (B, d_in); weights are PyTorch (out, in),
    biases are (out, 1). Returns (B, d_out) float32."""
    w1, b1, w2, b2, w3, b3, w4, b4 = params
    B, d_in = x.shape
    d_out = w4.shape[0]
    x = x.astype(jnp.float32)

    # Balanced batch tiles: choose tile count first, then the (128-multiple)
    # tile size, so enlarging the target tile never creates a mostly-padded
    # last tile.  Force >=2 tiles for non-tiny batches so v7x's two
    # TensorCores both get work under dimension_semantics=("parallel",).
    num_tiles = _cdiv(B, target_tile_b)
    if num_tiles == 1 and B > 256:
        num_tiles = 2
    tile_b = _round_up(_cdiv(B, num_tiles), 128)
    num_tiles = _cdiv(B, tile_b)

    # Per-tile VMEM footprint estimate (f32 intermediates + double-buffered I/O
    # tiles + weights), with headroom; capped for v7x's 64 MiB physical VMEM.
    act_bytes = (128 + 64 + 32) * tile_b * 4
    io_bytes = 2 * tile_b * (d_in + d_out) * 4
    w_bytes = 2 * 4 * sum(int(p.size) for p in params)
    vmem_limit = int(min(max(2 * (act_bytes + io_bytes + w_bytes), 32 << 20), 48 << 20))

    # Advisory cost estimate (FLOPs per sample = 2*sum(in*out) = 21312).
    flops = 2 * (d_in * 128 + 128 * 64 + 64 * 32 + 32 * d_out) * B
    bytes_accessed = 4 * (B * (d_in + d_out) + sum(int(p.size) for p in params))
    cost = pl.CostEstimate(flops=flops, transcendentals=0,
                           bytes_accessed=bytes_accessed)

    # Weights/biases: full-array blocks, constant index map -> stay VMEM-resident
    # across all batch-tile grid iterations.
    const_spec = lambda a: pl.BlockSpec(a.shape, lambda i: (0, 0))

    out = pl.pallas_call(
        _qnet_kernel,
        out_shape=jax.ShapeDtypeStruct((d_out, B), jnp.float32),
        grid=(num_tiles,),
        in_specs=[
            pl.BlockSpec((tile_b, d_in), lambda i: (i, 0)),   # x batch tile (native layout)
            const_spec(w1), const_spec(b1),
            const_spec(w2), const_spec(b2),
            const_spec(w3), const_spec(b3),
            const_spec(w4), const_spec(b4),
        ],
        out_specs=pl.BlockSpec((d_out, tile_b), lambda i: (0, i)),  # lane-dense output
        compiler_params=pltpu.CompilerParams(
            dimension_semantics=("parallel",),
            vmem_limit_bytes=vmem_limit),
        cost_estimate=cost,
    )(x, w1, b1, w2, b2, w3, b3, w4, b4)

    # (d_out, B) -> (B, d_out); trivial (size-1 leading dim) relayout.
    return jnp.transpose(out)


def init_qnet_params(key, input_dim=3, output_dim=1):
    # Mimics PyTorch nn.Linear default init: U(-1/sqrt(fan_in), 1/sqrt(fan_in)).
    dims = [(input_dim, 128), (128, 64), (64, 32), (32, output_dim)]
    keys = jax.random.split(key, 2 * len(dims))
    params = []
    for idx, (fan_in, fan_out) in enumerate(dims):
        bound = 1.0 / float(jnp.sqrt(jnp.float32(fan_in)))
        w = jax.random.uniform(keys[2 * idx], (fan_out, fan_in), jnp.float32, -bound, bound)
        b = jax.random.uniform(keys[2 * idx + 1], (fan_out, 1), jnp.float32, -bound, bound)
        params += [w, b]
    return tuple(params)


def _reference(x, params):
    w1, b1, w2, b2, w3, b3, w4, b4 = params
    h = jnp.maximum(x.astype(jnp.float32) @ w1.T + b1[:, 0], 0.0)
    h = jnp.maximum(h @ w2.T + b2[:, 0], 0.0)
    h = jnp.maximum(h @ w3.T + b3[:, 0], 0.0)
    return h @ w4.T + b4[:, 0]


if __name__ == "__main__":
    key = jax.random.PRNGKey(0)
    k_x, k_x2, k_p = jax.random.split(key, 3)

    input_dim, output_dim = 3, 1
    params = init_qnet_params(k_p, input_dim, output_dim)

    # Small batch: single tile, partial block.
    batch = 8
    x = jax.random.normal(k_x, (batch, input_dim), jnp.float32)
    out = qnet_forward(x, params)
    jax.block_until_ready(out)
    ref = _reference(x, params)
    assert out.shape == (batch, output_dim)
    assert jnp.allclose(out, ref, atol=1e-5, rtol=1e-5)

    # Larger batch: exercises the 2-tile grid + masked partial last block path.
    batch2 = 300
    x2 = jax.random.normal(k_x2, (batch2, input_dim), jnp.float32)
    out2 = qnet_forward(x2, params)
    jax.block_until_ready(out2)
    ref2 = _reference(x2, params)
    assert out2.shape == (batch2, output_dim)
    assert jnp.allclose(out2, ref2, atol=1e-5, rtol=1e-5)

    print("KERNEL_OK")
</pallas_src>

<mosaic_0001>
module attributes {stable_mosaic.version = 11 : i64} {
  func.func @_qnet_kernel(%arg0: i32, %arg1: memref<128x3xf32, #tpu.memory_space<vmem>>, %arg2: memref<128x3xf32, #tpu.memory_space<vmem>>, %arg3: memref<128x1xf32, #tpu.memory_space<vmem>>, %arg4: memref<64x128xf32, #tpu.memory_space<vmem>>, %arg5: memref<64x1xf32, #tpu.memory_space<vmem>>, %arg6: memref<32x64xf32, #tpu.memory_space<vmem>>, %arg7: memref<32x1xf32, #tpu.memory_space<vmem>>, %arg8: memref<1x32xf32, #tpu.memory_space<vmem>>, %arg9: memref<1x1xf32, #tpu.memory_space<vmem>>, %arg10: memref<1x128xf32, #tpu.memory_space<vmem>>) attributes {dimension_semantics = [#tpu.dimension_semantics<parallel>], iteration_bounds = array<i64: 1>, scalar_prefetch = 0 : i64, scratch_operands = 0 : i64, tpu.core_type = #tpu.core_type<tc>, window_params = [{transform_indices = @transform_0, window_bounds = array<i64: 128, 3>}, {pipeline_mode = #tpu.pipeline_mode<synchronous>, transform_indices = @transform_1, window_bounds = array<i64: 128, 3>}, {pipeline_mode = #tpu.pipeline_mode<synchronous>, transform_indices = @transform_2, window_bounds = array<i64: 128, 1>}, {pipeline_mode = #tpu.pipeline_mode<synchronous>, transform_indices = @transform_3, window_bounds = array<i64: 64, 128>}, {pipeline_mode = #tpu.pipeline_mode<synchronous>, transform_indices = @transform_4, window_bounds = array<i64: 64, 1>}, {pipeline_mode = #tpu.pipeline_mode<synchronous>, transform_indices = @transform_5, window_bounds = array<i64: 32, 64>}, {pipeline_mode = #tpu.pipeline_mode<synchronous>, transform_indices = @transform_6, window_bounds = array<i64: 32, 1>}, {pipeline_mode = #tpu.pipeline_mode<synchronous>, transform_indices = @transform_7, window_bounds = array<i64: 1, 32>}, {pipeline_mode = #tpu.pipeline_mode<synchronous>, transform_indices = @transform_8, window_bounds = array<i64: 1, 1>}, {transform_indices = @transform_9, window_bounds = array<i64: 1, 128>}]} {
    %c0 = arith.constant 0 : index
    %c0_0 = arith.constant 0 : index
    %0 = vector.load %arg1[%c0, %c0_0] : memref<128x3xf32, #tpu.memory_space<vmem>>, vector<128x3xf32>
    %c0_1 = arith.constant 0 : index
    %c0_2 = arith.constant 0 : index
    %1 = vector.load %arg2[%c0_1, %c0_2] : memref<128x3xf32, #tpu.memory_space<vmem>>, vector<128x3xf32>
    %cst = arith.constant dense<0.000000e+00> : vector<128x128xf32>
    %2 = tpu.matmul %1, %0, %cst {dimension_numbers = #tpu.dot_dimension_numbers<[1], [1], [0], [0], [0, 0, 1, 0], [], []>} : vector<128x3xf32>, vector<128x3xf32>, vector<128x128xf32> -> vector<128x128xf32>
    %c0_3 = arith.constant 0 : index
    %c0_4 = arith.constant 0 : index
    %3 = vector.load %arg3[%c0_3, %c0_4] : memref<128x1xf32, #tpu.memory_space<vmem>>, vector<128x1xf32>
    %4 = vector.broadcast %3 : vector<128x1xf32> to vector<128x128xf32>
    %5 = arith.addf %2, %4 : vector<128x128xf32>
    %cst_5 = arith.constant 0.000000e+00 : f32
    %6 = vector.broadcast %cst_5 : f32 to vector<128x128xf32>
    %7 = arith.maximumf %5, %6 : vector<128x128xf32>
    %c0_6 = arith.constant 0 : index
    %c0_7 = arith.constant 0 : index
    %8 = vector.load %arg4[%c0_6, %c0_7] : memref<64x128xf32, #tpu.memory_space<vmem>>, vector<64x128xf32>
    %cst_8 = arith.constant dense<0.000000e+00> : vector<64x128xf32>
    %9 = tpu.matmul %8, %7, %cst_8 {dimension_numbers = #tpu.dot_dimension_numbers<[1], [0], [0], [1], [0, 0, 1, 1], [], []>} : vector<64x128xf32>, vector<128x128xf32>, vector<64x128xf32> -> vector<64x128xf32>
    %c0_9 = arith.constant 0 : index
    %c0_10 = arith.constant 0 : index
    %10 = vector.load %arg5[%c0_9, %c0_10] : memref<64x1xf32, #tpu.memory_space<vmem>>, vector<64x1xf32>
    %11 = vector.broadcast %10 : vector<64x1xf32> to vector<64x128xf32>
    %12 = arith.addf %9, %11 : vector<64x128xf32>
    %cst_11 = arith.constant 0.000000e+00 : f32
    %13 = vector.broadcast %cst_11 : f32 to vector<64x128xf32>
    %14 = arith.maximumf %12, %13 : vector<64x128xf32>
    %c0_12 = arith.constant 0 : index
    %c0_13 = arith.constant 0 : index
    %15 = vector.load %arg6[%c0_12, %c0_13] : memref<32x64xf32, #tpu.memory_space<vmem>>, vector<32x64xf32>
    %cst_14 = arith.constant dense<0.000000e+00> : vector<32x128xf32>
    %16 = tpu.matmul %15, %14, %cst_14 {dimension_numbers = #tpu.dot_dimension_numbers<[1], [0], [0], [1], [0, 0, 1, 1], [], []>} : vector<32x64xf32>, vector<64x128xf32>, vector<32x128xf32> -> vector<32x128xf32>
    %c0_15 = arith.constant 0 : index
    %c0_16 = arith.constant 0 : index
    %17 = vector.load %arg7[%c0_15, %c0_16] : memref<32x1xf32, #tpu.memory_space<vmem>>, vector<32x1xf32>
    %18 = vector.broadcast %17 : vector<32x1xf32> to vector<32x128xf32>
    %19 = arith.addf %16, %18 : vector<32x128xf32>
    %cst_17 = arith.constant 0.000000e+00 : f32
    %20 = vector.broadcast %cst_17 : f32 to vector<32x128xf32>
    %21 = arith.maximumf %19, %20 : vector<32x128xf32>
    %c0_18 = arith.constant 0 : index
    %c0_19 = arith.constant 0 : index
    %22 = vector.load %arg8[%c0_18, %c0_19] : memref<1x32xf32, #tpu.memory_space<vmem>>, vector<1x32xf32>
    %cst_20 = arith.constant dense<0.000000e+00> : vector<1x128xf32>
    %23 = tpu.matmul %22, %21, %cst_20 {dimension_numbers = #tpu.dot_dimension_numbers<[1], [0], [0], [1], [0, 0, 1, 1], [], []>} : vector<1x32xf32>, vector<32x128xf32>, vector<1x128xf32> -> vector<1x128xf32>
    %c0_21 = arith.constant 0 : index
    %c0_22 = arith.constant 0 : index
    %24 = vector.load %arg9[%c0_21, %c0_22] : memref<1x1xf32, #tpu.memory_space<vmem>>, vector<1x1xf32>
    %25 = vector.broadcast %24 : vector<1x1xf32> to vector<1x128xf32>
    %26 = arith.addf %23, %25 : vector<1x128xf32>
    %c0_23 = arith.constant 0 : index
    %c0_24 = arith.constant 0 : index
    %27 = vector.load %arg10[%c0_23, %c0_24] : memref<1x128xf32, #tpu.memory_space<vmem>>, vector<1x128xf32>
    tpu.vector_store %arg10[%c0_23, %c0_24], %26 {strides = array<i32>} : memref<1x128xf32, #tpu.memory_space<vmem>>, vector<1x128xf32>,
    return
  }
  func.func @transform_0(%arg0: i32) -> (i32, i32) {
    %c0_i32 = arith.constant 0 : i32
    %c0_i32_0 = arith.constant 0 : i32
    return %arg0, %c0_i32 : i32, i32
  }
  func.func @transform_1(%arg0: i32) -> (i32, i32) {
    %c0_i32 = arith.constant 0 : i32
    %c0_i32_0 = arith.constant 0 : i32
    %c0_i32_1 = arith.constant 0 : i32
    return %c0_i32, %c0_i32_0 : i32, i32
  }
  func.func @transform_2(%arg0: i32) -> (i32, i32) {
    %c0_i32 = arith.constant 0 : i32
    %c0_i32_0 = arith.constant 0 : i32
    %c0_i32_1 = arith.constant 0 : i32
    return %c0_i32, %c0_i32_0 : i32, i32
  }
  func.func @transform_3(%arg0: i32) -> (i32, i32) {
    %c0_i32 = arith.constant 0 : i32
    %c0_i32_0 = arith.constant 0 : i32
    %c0_i32_1 = arith.constant 0 : i32
    return %c0_i32, %c0_i32_0 : i32, i32
  }
  func.func @transform_4(%arg0: i32) -> (i32, i32) {
    %c0_i32 = arith.constant 0 : i32
    %c0_i32_0 = arith.constant 0 : i32
    %c0_i32_1 = arith.constant 0 : i32
    return %c0_i32, %c0_i32_0 : i32, i32
  }
  func.func @transform_5(%arg0: i32) -> (i32, i32) {
    %c0_i32 = arith.constant 0 : i32
    %c0_i32_0 = arith.constant 0 : i32
    %c0_i32_1 = arith.constant 0 : i32
    return %c0_i32, %c0_i32_0 : i32, i32
  }
  func.func @transform_6(%arg0: i32) -> (i32, i32) {
    %c0_i32 = arith.constant 0 : i32
    %c0_i32_0 = arith.constant 0 : i32
    %c0_i32_1 = arith.constant 0 : i32
    return %c0_i32, %c0_i32_0 : i32, i32
  }
  func.func @transform_7(%arg0: i32) -> (i32, i32) {
    %c0_i32 = arith.constant 0 : i32
    %c0_i32_0 = arith.constant 0 : i32
    %c0_i32_1 = arith.constant 0 : i32
    return %c0_i32, %c0_i32_0 : i32, i32
  }
  func.func @transform_8(%arg0: i32) -> (i32, i32) {
    %c0_i32 = arith.constant 0 : i32
    %c0_i32_0 = arith.constant 0 : i32
    %c0_i32_1 = arith.constant 0 : i32
    return %c0_i32, %c0_i32_0 : i32, i32
  }
  func.func @transform_9(%arg0: i32) -> (i32, i32) {
    %c0_i32 = arith.constant 0 : i32
    %c0_i32_0 = arith.constant 0 : i32
    return %c0_i32, %arg0 : i32, i32
  }
}

</mosaic_0001>

<bundles_post_ra>
// kernel: tpu_custom_call.1
= control target key start
LH: loop header
LB: loop body
LE: loop exit
PB: predicated region body
PF: predicated region fallthrough
CT: control target
= control target key end

     0   :  { %s1543_s0 = inlined_call_operand.vmem [shape: f32[8,3], index: 0, kind: input, shape index: {}]   ;;  %s1544_s1 = inlined_call_operand.vmem [shape: f32[128,3], index: 1, kind: input, shape index: {}]   ;;  %s1545_s2 = inlined_call_operand.vmem [shape: f32[128,1], index: 2, kind: input, shape index: {}]   ;;  %s1546_s3 = inlined_call_operand.vmem [shape: f32[64,128], index: 3, kind: input, shape index: {}]   ;;  %s1547_s4 = inlined_call_operand.vmem [shape: f32[64,1], index: 4, kind: input, shape index: {}]   ;;  %s1548_s5 = inlined_call_operand.vmem [shape: f32[32,64], index: 5, kind: input, shape index: {}]   ;;  %s1549_s6 = inlined_call_operand.vmem [shape: f32[32,1], index: 6, kind: input, shape index: {}]   ;;  %s1550_s7 = inlined_call_operand.vmem [shape: f32[1,32], index: 7, kind: input, shape index: {}]   ;;  %s1551_s8 = inlined_call_operand.<no memory space> [shape: f32[1,1], index: 8, kind: input, shape index: {}]   ;;  %s1552_s9 = inlined_call_operand.hbm [shape: f32[1,8], index: 9, kind: output, shape index: {}]  }
   0x1   :  { %v14_v0 = vstv %s1551_s8 }
   0x2   :  { %15 = vst [vmem:[#allocation2] sm:$0x1] %v14_v0 }
   0x3   :  { %v35_v1 = vld [vmem:[%s1543_s0] sm:$0xff]  ;;  %v36_v2 = vld [vmem:[%s1543_s0 + $0x8] sm:$0xff]  ;;  %vm163_vm0 = vcmask 23552   ;;  %v37_v3 = vld [vmem:[%s1543_s0 + $0x10] sm:$0xff]  ;;  %v1196_v7 = vmov 0  }
   0x4   :  { %v1063_v4 = vpack.c.bf16 %v36_v2, %v35_v1  ;;  %vm1265_vm1 = vmpackc.low %vm163_vm0, %vm163_vm0  ;;  %v38_v6 = vld [vmem:[%s1543_s0 + $0x18] sm:$0xff]  ;;  %1170 = vset.pattern.permute.xlu0 %v1196_v7  ;;  %1171 = vset.pattern.permute.xlu1 %v1196_v7  ;;  %v51_v9 = vld [vmem:[%s1544_s1] sm:$0xff] }
   0x5   :  { %v1069_v8 = vpack.c.bf16 %v38_v6, %v37_v3  ;;  %v39_v10 = vld [vmem:[%s1543_s0 + $0x20] sm:$0xff]  ;;  %v40_v11 = vld [vmem:[%s1543_s0 + $0x28] sm:$0xff]  ;;  %962 = vmatprep.mubr.msk.f32.mxu0 %vm163_vm0, %v51_v9  ;;  %v69_v14 = vld [vmem:[%s1545_s2 + $0x10] sm:$0xff] }
   0x6   :  { %1065 = vmatprep.subr.msk.bf16.mxu0 %vm1265_vm1, %v1063_v4  ;;  %v1075_v12 = vpack.c.bf16 %v40_v11, %v39_v10  ;;  %v67_v13 = vld [vmem:[%s1545_s2] sm:$0xff]  ;;  %v68_v15 = vld [vmem:[%s1545_s2 + $0x8] sm:$0xff]  ;;  %95 = vperm.xlu1 %1171, %v69_v14   ;;  %v70_v16 = vld [vmem:[%s1545_s2 + $0x18] sm:$0xff] }
   0x7   :  { %1068 = vmatpush3.bf16.xpose.msk.msra.mxu0 %vm1265_vm1, %v1063_v4  ;;  %85 = vperm.xlu0 %1170, %v67_v13   ;;  %v41_v17 = vld [vmem:[%s1543_s0 + $0x30] sm:$0xff]  ;;  %v42_v18 = vld [vmem:[%s1543_s0 + $0x38] sm:$0xff]  ;;  %v71_v19 = vld [vmem:[%s1545_s2 + $0x20] sm:$0xff] }
   0x8   :  { %1071 = vmatprep.subr.msk.bf16.mxu0 %vm1265_vm1, %v1069_v8  ;;  %v1081_v20 = vpack.c.bf16 %v42_v18, %v41_v17  ;;  %v72_v21 = vld [vmem:[%s1545_s2 + $0x28] sm:$0xff]  ;;  %v73_v22 = vld [vmem:[%s1545_s2 + $0x30] sm:$0xff] }
   0xa   :  { %100 = vperm.xlu1 %1171, %v70_v16  }
   0xb   :  { %90 = vperm.xlu0 %1170, %v68_v15  }
   0xe   :  { %110 = vperm.xlu1 %1171, %v72_v21  }
   0xf   :  { %1074 = vmatpush3.bf16.xpose.msk.msra.mxu0 %vm1265_vm1, %v1069_v8  ;;  %105 = vperm.xlu0 %1170, %v71_v19  }
  0x10   :  { %1077 = vmatprep.subr.msk.bf16.mxu0 %vm1265_vm1, %v1075_v12 }
  0x17   :  { %1080 = vmatpush3.bf16.xpose.msk.msra.mxu0 %vm1265_vm1, %v1075_v12 }
  0x18   :  { %16 = vsyncpa [#allocation4], 0  ;;  %1083 = vmatprep.subr.msk.bf16.mxu0 %vm1265_vm1, %v1081_v20  ;;  %v74_v23 = vld [vmem:[%s1545_s2 + $0x38] sm:$0xff]  ;;  %v43_v24 = vld [vmem:[%s1543_s0 + $0x40] sm:$0xff]  ;;  %115 = vperm.xlu0 %1170, %v73_v22   ;;  %vm618_vm2 = vcmask 523264   ;;  %vm1198_vm3 = vmmov 0  }
  0x19   :  { %v44_v25 = vld [vmem:[%s1543_s0 + $0x48] sm:$0xff]  ;;  %v75_v26 = vld [vmem:[%s1545_s2 + $0x40] sm:$0xff]  ;;  %120 = vperm.xlu1 %1171, %v74_v23   ;;  %v77_v29 = vld [vmem:[%s1545_s2 + $0x50] sm:$0xff]  ;;  %vm731_vm4 = vcmask 261120  }
  0x1a   :  { %v1087_v27 = vpack.c.bf16 %v44_v25, %v43_v24  ;;  %v76_v28 = vld [vmem:[%s1545_s2 + $0x48] sm:$0xff]  ;;  %v78_v30 = vld [vmem:[%s1545_s2 + $0x58] sm:$0xff]  ;;  %v45_v31 = vld [vmem:[%s1543_s0 + $0x50] sm:$0xff] }
  0x1b   :  { %v46_v32 = vld [vmem:[%s1543_s0 + $0x58] sm:$0xff]  ;;  %v79_v33 = vld [vmem:[%s1545_s2 + $0x60] sm:$0xff]  ;;  %v80_v35 = vld [vmem:[%s1545_s2 + $0x68] sm:$0xff] }
  0x1c   :  { %125 = vperm.xlu0 %1170, %v75_v26   ;;  %v1093_v34 = vpack.c.bf16 %v46_v32, %v45_v31  ;;  %v81_v36 = vld [vmem:[%s1545_s2 + $0x70] sm:$0xff]  ;;  %v82_v37 = vld [vmem:[%s1545_s2 + $0x78] sm:$0xff]  ;;  %v47_v38 = vld [vmem:[%s1543_s0 + $0x60] sm:$0xff]  ;;  %s1200_s2 = smov [#allocation3]  }
  0x1d   :  { %130 = vperm.xlu1 %1171, %v76_v28   ;;  %v48_v39 = vld [vmem:[%s1543_s0 + $0x68] sm:$0xff]  ;;  %v429_v40 = vld [vmem:[%s1547_s4] sm:$0xff]  ;;  %v431_v43 = vld [vmem:[%s1547_s4 + $0x10] sm:$0xff]  ;;  %s812_s11 = sshll.u32 %s1200_s2, 4  ;;  %s813_s11 = int_to_ptr.vmem [resolvable:$true] %s812_s11 }
  0x1e   :  { %v1099_v41 = vpack.c.bf16 %v48_v39, %v47_v38  ;;  %v430_v42 = vld [vmem:[%s1547_s4 + $0x8] sm:$0xff]  ;;  %v432_v44 = vld [vmem:[%s1547_s4 + $0x18] sm:$0xff]  ;;  %v49_v45 = vld [vmem:[%s1543_s0 + $0x70] sm:$0xff]  ;;  %s1172_s12 = scalar_lea.vmem %s813_s11, 16  ;;  %s1176_s13 = scalar_lea.vmem %s813_s11, 32 }
  0x1f   :  { %1086 = vmatpush3.bf16.xpose.msk.msra.mxu0 %vm1265_vm1, %v1081_v20  ;;  %v50_v46 = vld [vmem:[%s1543_s0 + $0x78] sm:$0xff]  ;;  %v433_v47 = vld [vmem:[%s1547_s4 + $0x20] sm:$0xff]  ;;  %v434_v49 = vld [vmem:[%s1547_s4 + $0x28] sm:$0xff]  ;;  %p1173_p0 = scmp.ne.s32.totalorder %s813_s11, %s1172_s12  ;;  %p1177_p1 = scmp.lt.s32.totalorder %s813_s11, %s813_s11 }
  0x20   :  { %1089 = vmatprep.subr.msk.bf16.mxu0 %vm1265_vm1, %v1087_v27  ;;  %135 = vperm.xlu0 %1170, %v77_v29   ;;  %v1105_v48 = vpack.c.bf16 %v50_v46, %v49_v45  ;;  %v435_v50 = vld [vmem:[%s1547_s4 + $0x30] sm:$0xff]  ;;  %v436_v51 = vld [vmem:[%s1547_s4 + $0x38] sm:$0xff]  ;;  %v594_v52 = vld [vmem:[%s1549_s6] sm:$0xff]  ;;  %p1178_p2 = scmp.lt.s32.totalorder %s1176_s13, %s1172_s12 }
  0x21   :  { %140 = vperm.xlu1 %1171, %v78_v30   ;;  %v595_v53 = vld [vmem:[%s1549_s6 + $0x8] sm:$0xff]  ;;  %v596_v54 = vld [vmem:[%s1549_s6 + $0x10] sm:$0xff]  ;;  %v597_v55 = vld [vmem:[%s1549_s6 + $0x18] sm:$0xff] }
  0x22   :  { %v52_v56 = vld [vmem:[%s1544_s1 + $0x8] sm:$0xff]  ;;  %v721_v57 = vld [vmem:[#allocation2] sm:$0x1]  ;;  %v53_v58 = vld [vmem:[%s1544_s1 + $0x10] sm:$0xff]  ;;  %p1179_p3 = por %p1178_p2, %p1177_p1 }
  0x23   :  { %v54_v59 = vld [vmem:[%s1544_s1 + $0x18] sm:$0xff]  ;;  %v55_v60 = vld [vmem:[%s1544_s1 + $0x20] sm:$0xff]  ;;  %v56_v61 = vld [vmem:[%s1544_s1 + $0x28] sm:$0xff] }
  0x24   :  { %145 = vperm.xlu0 %1170, %v79_v33   ;;  %v57_v62 = vld [vmem:[%s1544_s1 + $0x30] sm:$0xff]  ;;  %v58_v63 = vld [vmem:[%s1544_s1 + $0x38] sm:$0xff]  ;;  %v59_v0 = vld [vmem:[%s1544_s1 + $0x40] sm:$0xff]  ;;  %p1180_p4 = pnand %p1179_p3, %p1173_p0 }
  0x25   :  { %150 = vperm.xlu1 %1171, %v80_v35   ;;  %v60_v1 = vld [vmem:[%s1544_s1 + $0x48] sm:$0xff]  ;;  %v61_v2 = vld [vmem:[%s1544_s1 + $0x50] sm:$0xff]  ;;  %v62_v3 = vld [vmem:[%s1544_s1 + $0x58] sm:$0xff] }
  0x26   :  { %v63_v4 = vld [vmem:[%s1544_s1 + $0x60] sm:$0xff]  ;;  %v64_v5 = vld [vmem:[%s1544_s1 + $0x68] sm:$0xff]  ;;  %v65_v6 = vld [vmem:[%s1544_s1 + $0x70] sm:$0xff] }
  0x27   :  { %1092 = vmatpush3.bf16.xpose.msk.msra.mxu0 %vm1265_vm1, %v1087_v27  ;;  %v66_v7 = vld [vmem:[%s1544_s1 + $0x78] sm:$0xff]  ;;  %v421_v8 = vld [vmem:[%s1546_s3] sm:$0xff] }
  0x28   :  { %1095 = vmatprep.subr.msk.bf16.mxu0 %vm1265_vm1, %v1093_v34  ;;  %155 = vperm.xlu0 %1170, %v81_v36  }
  0x29   :  { %160 = vperm.xlu1 %1171, %v82_v37   ;;  %1018 = vmatprep.mubr.f32.mxu1 %v421_v8 }
  0x2c   :  { %439 = vperm.xlu0 %1170, %v429_v40  }
  0x2d   :  { %444 = vperm.xlu1 %1171, %v430_v42  }
  0x2f   :  { %1098 = vmatpush3.bf16.xpose.msk.msra.mxu0 %vm1265_vm1, %v1093_v34 }
  0x30   :  { %1101 = vmatprep.subr.msk.bf16.mxu0 %vm1265_vm1, %v1099_v41  ;;  %449 = vperm.xlu0 %1170, %v431_v43  }
  0x31   :  { %454 = vperm.xlu1 %1171, %v432_v44  }
  0x34   :  { %459 = vperm.xlu0 %1170, %v433_v47  }
  0x35   :  { %464 = vperm.xlu1 %1171, %v434_v49  }
  0x37   :  { %1104 = vmatpush3.bf16.xpose.msk.msra.mxu0 %vm1265_vm1, %v1099_v41 }
  0x38   :  { %1107 = vmatprep.subr.msk.bf16.mxu0 %vm1265_vm1, %v1105_v48  ;;  %469 = vperm.xlu0 %1170, %v435_v50  }
  0x39   :  { %474 = vperm.xlu1 %1171, %v436_v51  }
  0x3c   :  { %600 = vperm.xlu0 %1170, %v594_v52  }
  0x3d   :  { %605 = vperm.xlu1 %1171, %v595_v53  }
  0x3f   :  { %1110 = vmatpush3.bf16.xpose.msk.msra.mxu0 %vm1265_vm1, %v1105_v48 }
  0x40   :  { %610 = vperm.xlu0 %1170, %v596_v54  }
  0x41   :  { %615 = vperm.xlu1 %1171, %v597_v55  }
  0x44   :  { %724 = vperm.xlu0 %1170, %v721_v57  }
  0x46   :  { %963 = vmatmul.mubr.msk.f32.vlgmr.msra.gmra.mrb[0].mxu0 %vm163_vm0, %v52_v56 }
  0x47   :  { %965 = vmatprep.mubr.msk.f32.mxu0 %vm163_vm0, %v53_v58 }
  0x4a   :  { %966 = vmatmul.mubr.msk.f32.gmra.mrb[2].mxu0 %vm163_vm0, %v54_v59 }
  0x4b   :  { %968 = vmatprep.mubr.msk.f32.mxu0 %vm163_vm0, %v55_v60 }
  0x4e   :  { %969 = vmatmul.mubr.msk.f32.gmra.mrb[4].mxu0 %vm163_vm0, %v56_v61 }
  0x4f   :  { %971 = vmatprep.mubr.msk.f32.mxu0 %vm163_vm0, %v57_v62 }
  0x52   :  { %972 = vmatmul.mubr.msk.f32.gmra.mrb[6].mxu0 %vm163_vm0, %v58_v63 }
  0x53   :  { %974 = vmatprep.mubr.msk.f32.mxu0 %vm163_vm0, %v59_v0 }
  0x56   :  { %975 = vmatmul.mubr.msk.f32.gmra.mrb[8].mxu0 %vm163_vm0, %v60_v1 }
  0x57   :  { %977 = vmatprep.mubr.msk.f32.mxu0 %vm163_vm0, %v61_v2 }
  0x5a   :  { %978 = vmatmul.mubr.msk.f32.gmra.mrb[10].mxu0 %vm163_vm0, %v62_v3 }
  0x5b   :  { %980 = vmatprep.mubr.msk.f32.mxu0 %vm163_vm0, %v63_v4 }
  0x5e   :  { %981 = vmatmul.mubr.msk.f32.gmra.mrb[12].mxu0 %vm163_vm0, %v64_v5 }
  0x5f   :  { %983 = vmatprep.mubr.msk.f32.mxu0 %vm163_vm0, %v65_v6 }
  0x62   :  { %984 = vmatmul.mubr.msk.f32.gmra.mrb[14].mxu0 %vm163_vm0, %v66_v7 }
  0x85   :  { %v96_v9 = vpop.permute.xlu1 %95 }
  0x86   :  { %v86_v10 = vpop.permute.xlu0 %85 }
  0x89   :  { %v101_v11 = vpop.permute.xlu1 %100 }
  0x8a   :  { %v91_v12 = vpop.permute.xlu0 %90 }
  0x8d   :  { %v111_v13 = vpop.permute.xlu1 %110 }
  0x8e   :  { %v106_v14 = vpop.permute.xlu0 %105 }
  0x97   :  { %v116_v23 = vpop.permute.xlu0 %115 }
  0x98   :  { %v121_v20 = vpop.permute.xlu1 %120 }
  0x9b   :  { %v126_v36 = vpop.permute.xlu0 %125 }
  0x9c   :  { %v131_v33 = vpop.permute.xlu1 %130 }
  0x9f   :  { %v136_v48 = vpop.permute.xlu0 %135 }
  0xa0   :  { %v141_v45 = vpop.permute.xlu1 %140 }
  0xa3   :  { %v146_v61 = vpop.permute.xlu0 %145 }
  0xa4   :  { %v151_v58 = vpop.permute.xlu1 %150 }
  0xa8   :  { %v161_v6 = vpop.permute.xlu1 %160 }
 0x119   :  { %v964_v15 = vpop.f32.mrb[0].mxu0 }
 0x11a   :  { %v332_v16 = vadd.f32 %v964_v15, %v91_v12  ;;  %v326_v17 = vpop.f32.mrb[1].mxu0 }
 0x11b   :  { %v327_v18 = vadd.f32 %v326_v17, %v86_v10  ;;  %v422_v17 = vld [vmem:[%s1546_s3 + $0x8] sm:$0xff] }
 0x11c   :  { %v406_v19 = vmax.f32 %v332_v16, 0.0 }
 0x11d   :  { %v405_v21 = vmax.f32 %v327_v18, 0.0  ;;  %v967_v22 = vpop.f32.mrb[2].mxu0  ;;  %v423_v18 = vld [vmem:[%s1546_s3 + $0x10] sm:$0xff] }
 0x11e   :  { %v342_v24 = vadd.f32 %v967_v22, %v101_v11  ;;  %v336_v25 = vpop.f32.mrb[3].mxu0  ;;  %v427_v22 = vld [vmem:[%s1546_s3 + $0x30] sm:$0xff] }
 0x11f   :  { %v337_v26 = vadd.f32 %v336_v25, %v96_v9  ;;  %v1111_v27 = vpack.c.bf16 %v406_v19, %v405_v21  ;;  %v156_v9 = vpop.permute.xlu0 %155  ;;  %v424_v19 = vld [vmem:[%s1546_s3 + $0x18] sm:$0xff]  ;;  %v426_v21 = vld [vmem:[%s1546_s3 + $0x28] sm:$0xff]  ;;  %v445_v25 = vpop.permute.xlu1 %444 }
 0x120   :  { %v408_v28 = vmax.f32 %v342_v24, 0.0  ;;  %v590_v24 = vld [vmem:[%s1548_s5] sm:$0xff] }
 0x121   :  { %v407_v29 = vmax.f32 %v337_v26, 0.0  ;;  %v970_v30 = vpop.f32.mrb[4].mxu0  ;;  %1112 = vmatprep.subr.bf16.mxu1 %v1111_v27 }
 0x122   :  { %v352_v31 = vadd.f32 %v970_v30, %v111_v13  ;;  %v346_v32 = vpop.f32.mrb[5].mxu0  ;;  %1114 = vmatpush3.bf16.msra.mxu1 %v1111_v27 }
 0x123   :  { %v1115_v34 = vpack.c.bf16 %v408_v28, %v407_v29  ;;  %v347_v35 = vadd.f32 %v346_v32, %v106_v14  ;;  %v440_v26 = vpop.permute.xlu0 %439  ;;  %v455_v27 = vpop.permute.xlu1 %454 }
 0x124   :  { %v410_v37 = vmax.f32 %v352_v31, 0.0 }
 0x125   :  { %v409_v38 = vmax.f32 %v347_v35, 0.0  ;;  %v973_v39 = vpop.f32.mrb[6].mxu0  ;;  %1116 = vmatprep.subr.bf16.mxu1 %v1115_v34 }
 0x126   :  { %v362_v40 = vadd.f32 %v973_v39, %v121_v20  ;;  %v356_v41 = vpop.f32.mrb[7].mxu0  ;;  %1118 = vmatpush3.bf16.msra.mxu1 %v1115_v34  ;;  %v425_v20 = vld [vmem:[%s1546_s3 + $0x20] sm:$0xff] }
 0x127   :  { %v1119_v42 = vpack.c.bf16 %v410_v37, %v409_v38  ;;  %v357_v43 = vadd.f32 %v356_v41, %v116_v23  ;;  %v428_v23 = vld [vmem:[%s1546_s3 + $0x38] sm:$0xff]  ;;  %v450_v29 = vpop.permute.xlu0 %449  ;;  %v465_v38 = vpop.permute.xlu1 %464 }
 0x128   :  { %v412_v44 = vmax.f32 %v362_v40, 0.0 }
 0x129   :  { %v411_v46 = vmax.f32 %v357_v43, 0.0  ;;  %v976_v47 = vpop.f32.mrb[8].mxu0  ;;  %1120 = vmatprep.subr.bf16.mxu1 %v1119_v42 }
 0x12a   :  { %v372_v49 = vadd.f32 %v976_v47, %v131_v33  ;;  %v366_v50 = vpop.f32.mrb[9].mxu0  ;;  %1122 = vmatpush3.bf16.msra.mxu1 %v1119_v42 }
 0x12b   :  { %v1123_v51 = vpack.c.bf16 %v412_v44, %v411_v46  ;;  %v367_v52 = vadd.f32 %v366_v50, %v126_v36  ;;  %v460_v41 = vpop.permute.xlu0 %459  ;;  %v475_v50 = vpop.permute.xlu1 %474 }
 0x12c   :  { %v414_v53 = vmax.f32 %v372_v49, 0.0 }
 0x12d   :  { %v413_v54 = vmax.f32 %v367_v52, 0.0  ;;  %v979_v55 = vpop.f32.mrb[10].mxu0  ;;  %1124 = vmatprep.subr.bf16.mxu1 %v1123_v51 }
 0x12e   :  { %v382_v56 = vadd.f32 %v979_v55, %v141_v45  ;;  %v376_v57 = vpop.f32.mrb[11].mxu0  ;;  %1126 = vmatpush3.bf16.msra.mxu1 %v1123_v51 }
 0x12f   :  { %v1127_v59 = vpack.c.bf16 %v414_v53, %v413_v54  ;;  %v377_v60 = vadd.f32 %v376_v57, %v136_v48  ;;  %v470_v53 = vpop.permute.xlu0 %469 }
 0x130   :  { %v416_v62 = vmax.f32 %v382_v56, 0.0 }
 0x131   :  { %v415_v63 = vmax.f32 %v377_v60, 0.0  ;;  %v982_v0 = vpop.f32.mrb[12].mxu0  ;;  %1128 = vmatprep.subr.bf16.mxu1 %v1127_v59 }
 0x132   :  { %v392_v1 = vadd.f32 %v982_v0, %v151_v58  ;;  %v386_v2 = vpop.f32.mrb[13].mxu0  ;;  %1130 = vmatpush3.bf16.msra.mxu1 %v1127_v59  ;;  %v1197_v0 = vmov 0.0|0.0  }
 0x133   :  { %v1131_v3 = vpack.c.bf16 %v416_v62, %v415_v63  ;;  %v387_v4 = vadd.f32 %v386_v2, %v146_v61  ;;  %v591_v61 = vld [vmem:[%s1548_s5 + $0x8] sm:$0xff]  ;;  %v592_v62 = vld [vmem:[%s1548_s5 + $0x10] sm:$0xff]  ;;  %v593_v63 = vld [vmem:[%s1548_s5 + $0x18] sm:$0xff]  ;;  %v606_v2 = vpop.permute.xlu1 %605 }
 0x134   :  { %v418_v5 = vmax.f32 %v392_v1, 0.0  ;;  %v1199_v1 = vmov 0.0  }
 0x135   :  { %v417_v7 = vmax.f32 %v387_v4, 0.0  ;;  %v985_v8 = vpop.f32.mrb[14].mxu0  ;;  %1132 = vmatprep.subr.bf16.mxu1 %v1131_v3 }
 0x136   :  { %v402_v10 = vadd.f32 %v985_v8, %v161_v6  ;;  %v396_v11 = vpop.f32.mrb[15].mxu0  ;;  %1134 = vmatpush3.bf16.msra.mxu1 %v1131_v3  ;;  %v601_v3 = vpop.permute.xlu0 %600 }
 0x137   :  { %v1135_v12 = vpack.c.bf16 %v418_v5, %v417_v7  ;;  %v397_v13 = vadd.f32 %v396_v11, %v156_v9  ;;  %v616_v9 = vpop.permute.xlu1 %615 }
 0x138   :  { %v420_v14 = vmax.f32 %v402_v10, 0.0 }
 0x139   :  { %v419_v15 = vmax.f32 %v397_v13, 0.0  ;;  %1136 = vmatprep.subr.bf16.mxu1 %v1135_v12 }
 0x13a   :  { %1138 = vmatpush3.bf16.msra.mxu1 %v1135_v12  ;;  %v611_v12 = vpop.permute.xlu0 %610 }
 0x13b   :  { %v1139_v16 = vpack.c.bf16 %v420_v14, %v419_v15 }
 0x13d   :  { %1140 = vmatprep.subr.bf16.mxu1 %v1139_v16 }
 0x13e   :  { %1142 = vmatpush3.bf16.msra.mxu1 %v1139_v16 }
 0x141   :  { %1019 = vmatmul.mubr.f32.vlgmr.msra.gmra.mrb[0].mxu1 %v422_v17 }
 0x142   :  { %1021 = vmatprep.mubr.f32.mxu1 %v423_v18 }
 0x145   :  { %1022 = vmatmul.mubr.f32.gmra.mrb[2].mxu1 %v424_v19 }
 0x146   :  { %1024 = vmatprep.mubr.f32.mxu1 %v425_v20  ;;  %v720_v20 = vld [vmem:[%s1550_s7] sm:$0x1] }
 0x149   :  { %1025 = vmatmul.mubr.f32.gmra.mrb[4].mxu1 %v426_v21  ;;  %v727_v21 = vlaneseq }
 0x14a   :  { %1027 = vmatprep.mubr.f32.mxu1 %v427_v22 }
 0x14b   :  { %v728_v22 = vshrl.u32 %v727_v21, 7 }
 0x14d   :  { %1028 = vmatmul.mubr.f32.gmra.mrb[6].mxu1 %v428_v23  ;;  %v729_v23 = vsub.s32 0, %v728_v22 }
 0x14e   :  { %1046 = vmatprep.mubr.msk.f32.mxu1 %vm618_vm2, %v590_v24  ;;  %v725_v24 = vpop.permute.xlu0 %724 }
 0x214   :  { %v1020_v28 = vpop.f32.mrb[0].mxu1 }
 0x215   :  { %v549_v30 = vadd.f32 %v1020_v28, %v445_v25  ;;  %v543_v31 = vpop.f32.mrb[1].mxu1  ;;  %v730_v25 = vrot.slane %v725_v24, %v729_v23 }
 0x216   :  { %v544_v32 = vadd.f32 %v543_v31, %v440_v26 }
 0x217   :  { %v583_v33 = vmax.f32 %v549_v30, 0.0 }
 0x218   :  { %v582_v34 = vmax.f32 %v544_v32, 0.0  ;;  %v1023_v35 = vpop.f32.mrb[2].mxu1 }
 0x219   :  { %v559_v36 = vadd.f32 %v1023_v35, %v455_v27  ;;  %v553_v37 = vpop.f32.mrb[3].mxu1 }
 0x21a   :  { %v1143_v39 = vpack.c.bf16 %v583_v33, %v582_v34  ;;  %v554_v40 = vadd.f32 %v553_v37, %v450_v29 }
 0x21b   :  { %v585_v42 = vmax.f32 %v559_v36, 0.0 }
 0x21c   :  { %v584_v43 = vmax.f32 %v554_v40, 0.0  ;;  %v1026_v44 = vpop.f32.mrb[4].mxu1  ;;  %1144 = vmatprep.subr.bf16.mxu1 %v1143_v39 }
 0x21d   :  { %v569_v45 = vadd.f32 %v1026_v44, %v465_v38  ;;  %v563_v46 = vpop.f32.mrb[5].mxu1  ;;  %1146 = vmatpush3.bf16.msra.mxu1 %v1143_v39 }
 0x21e   :  { %v1147_v47 = vpack.c.bf16 %v585_v42, %v584_v43  ;;  %v564_v48 = vadd.f32 %v563_v46, %v460_v41 }
 0x21f   :  { %v587_v49 = vmax.f32 %v569_v45, 0.0 }
 0x220   :  { %v586_v51 = vmax.f32 %v564_v48, 0.0  ;;  %v1029_v52 = vpop.f32.mrb[6].mxu1  ;;  %1148 = vmatprep.subr.bf16.mxu1 %v1147_v47 }
 0x221   :  { %v579_v54 = vadd.f32 %v1029_v52, %v475_v50  ;;  %v573_v55 = vpop.f32.mrb[7].mxu1  ;;  %1150 = vmatpush3.bf16.msra.mxu1 %v1147_v47 }
 0x222   :  { %v1151_v56 = vpack.c.bf16 %v587_v49, %v586_v51  ;;  %v574_v57 = vadd.f32 %v573_v55, %v470_v53 }
 0x223   :  { %v589_v58 = vmax.f32 %v579_v54, 0.0 }
 0x224   :  { %v588_v59 = vmax.f32 %v574_v57, 0.0  ;;  %1152 = vmatprep.subr.bf16.mxu1 %v1151_v56 }
 0x225   :  { %1154 = vmatpush3.bf16.msra.mxu1 %v1151_v56 }
 0x226   :  { %v1155_v60 = vpack.c.bf16 %v589_v58, %v588_v59 }
 0x228   :  { %1156 = vmatprep.subr.bf16.mxu1 %v1155_v60 }
 0x229   :  { %1158 = vmatpush3.bf16.msra.mxu1 %v1155_v60 }
 0x22a   :  { %1159 = vmatprep.subr.bf16.mxu1 %v1197_v0 }
 0x22c   :  { %1047 = vmatmul.mubr.msk.f32.vlgmr.msra.gmra.mrb[8].mxu1 %vm618_vm2, %v591_v61 }
 0x22d   :  { %1049 = vmatprep.mubr.msk.f32.mxu1 %vm618_vm2, %v592_v62 }
 0x230   :  { %1050 = vmatmul.mubr.msk.f32.gmra.mrb[10].mxu1 %vm618_vm2, %v593_v63 }
 0x231   :  { %1060 = vmatprep.mubr.msk.f32.mxu1 %vm1198_vm3, %v1199_v1 }
 0x2ff   :  { %v1048_v4 = vpop.f32.mrb[8].mxu1 }
 0x300   :  { %v703_v5 = vadd.f32 %v1048_v4, %v606_v2  ;;  %v697_v6 = vpop.f32.mrb[9].mxu1 }
 0x301   :  { %v698_v7 = vadd.f32 %v697_v6, %v601_v3 }
 0x302   :  { %v717_v8 = vmax.f32 %v703_v5, 0.0 }
 0x303   :  { %v716_v10 = vmax.f32 %v698_v7, 0.0  ;;  %v1051_v11 = vpop.f32.mrb[10].mxu1 }
 0x304   :  { %v713_v13 = vadd.f32 %v1051_v11, %v616_v9  ;;  %v707_v14 = vpop.f32.mrb[11].mxu1 }
 0x305   :  { %v1160_v15 = vpack.c.bf16 %v717_v8, %v716_v10  ;;  %v708_v16 = vadd.f32 %v707_v14, %v611_v12 }
 0x306   :  { %v719_v17 = vmax.f32 %v713_v13, 0.0 }
 0x307   :  { %v718_v18 = vmax.f32 %v708_v16, 0.0  ;;  %1161 = vmatpush3.bf16.msra.mxu1 %v1160_v15 }
 0x308   :  { %1162 = vmatprep.subr.bf16.mxu1 %v1197_v0 }
 0x309   :  { %v1163_v19 = vpack.c.bf16 %v719_v17, %v718_v18 }
 0x30b   :  { %1164 = vmatpush3.bf16.msra.mxu1 %v1163_v19 }
 0x30e   :  { %1061 = vmatmul.mubr.msk.f32.vlgmr.msra.gmra.mrb[12].mxu1 %vm731_vm4, %v720_v20 }
 0x3e1   :  { %v801_v26 = vpop.f32.mrb[12].mxu1 }
 0x3e2   :  { %v802_v27 = vadd.f32 %v801_v26, %v730_v25  ;;  %v1062_v28 = vpop.f32.mrb[13].mxu1 }
 0x3e4   :  { %805 = vst [vmem:[#allocation3] sm:$0x1] %v802_v27 }
 0x3e5   :  { %1183 = shalt.err (!%p1180_p4)
}
 0x3e6   :  { %s1184_s1 = scalar_lea.hbm %s1552_s9, 16 }
 0x3e7   :  { %p1185_p5 = scmp.ne.s32.totalorder %s1552_s9, %s1184_s1  ;;  %p1188_p6 = scmp.lt.u32.totalorder %s1184_s1, %s1552_s9 }
 0x3e9   :  { %p1190_p7 = pnand %p1188_p6, %p1185_p5 }
 0x3eb   :  { %1193 = shalt.err (!%p1190_p7)
}
 0x3ec   :  { %815 = dma.vmem_to_hbm [thread:$0]  %s813_s11, 16, %s1552_s9, [#allocation4]  }
 0x3ed   :  { %1194 = dma.done.wait [#allocation4], 16  }
 0x3ee   :  { %1195 = vsyncadd [#allocation4], 4294967280 }
 0x3ef   :  { %819 = vsyncpa [#allocation4], 1 }

</bundles_post_ra>
